<compile_context>
chip_gen: v7x
topology: tpu7x:2x2x1
jax: 0.10.0
libtpu: 0.0.40
codegen_flags: <defaults>
</compile_context>

<pallas_src>
import functools

import jax
import jax.numpy as jnp
from jax.experimental import pallas as pl
from jax.experimental.pallas import tpu as pltpu


# --------------------------------------------------------------------------- #
# Kernel
# --------------------------------------------------------------------------- #
def _angle_loss_kernel(tgt_ref, adj_ref, cos_ref, loss_ref, m_sc, l_sc, *, gamma):
    """Grid = (B tiles, C tiles); C is the streaming ('arbitrary') axis.

    tgt_ref:  (tb, 1) int32  -- target class per row (global index)
    adj_ref:  (tb, 1) f32    -- adjusted target logit: cos_t + (phi_t - cos_t)*scale
    cos_ref:  (tb, tc)       -- cos_theta tile (any float dtype; padded cols = -1e30)
    loss_ref: (tb, 1) f32    -- per-row focal loss (written at last C tile)
    m_sc, l_sc: (tb, 1) f32  -- running max / running sum of exp
    """
    c_idx = pl.program_id(1)
    n_c = pl.num_programs(1)

    @pl.when(c_idx == 0)
    def _():
        m_sc[...] = jnp.full_like(m_sc, -jnp.inf)
        l_sc[...] = jnp.zeros_like(l_sc)

    cos = cos_ref[...].astype(jnp.float32)           # (tb, tc) f32 compute
    adj = adj_ref[...]                               # (tb, 1)  f32
    tb, tc = cos.shape

    # Local (within-tile) target column per row -> one-hot mask. Targets that
    # live in another C tile never match (local index out of [0, tc)).
    tgt_local = tgt_ref[...] - c_idx * tc            # (tb, 1)
    col = jax.lax.broadcasted_iota(jnp.int32, (tb, tc), 1)
    mask = col == tgt_local                          # (tb, tc)

    # output = cos_theta with the target column replaced by the adjusted logit.
    out = jnp.where(mask, adj, cos)

    # Online logsumexp over the class axis.
    m_new = jnp.maximum(m_sc[...], jnp.max(out, axis=-1, keepdims=True))
    alpha = jnp.exp(m_sc[...] - m_new)
    l_sc[...] = alpha * l_sc[...] + jnp.sum(jnp.exp(out - m_new),
                                            axis=-1, keepdims=True)
    m_sc[...] = m_new

    @pl.when(c_idx == n_c - 1)
    def _():
        lse = m_sc[...] + jnp.log(l_sc[...])
        logpt = adj - lse                            # (tb, 1)
        pt = jnp.exp(logpt)
        if gamma == 0:
            per_row = -logpt
        elif isinstance(gamma, int) and gamma > 0:
            w = 1.0 - pt
            fw = w
            for _ in range(gamma - 1):               # repeated multiply, no pow()
                fw = fw * w
            per_row = -fw * logpt
        else:
            per_row = -((1.0 - pt) ** gamma) * logpt
        loss_ref[...] = per_row.astype(loss_ref.dtype)


# --------------------------------------------------------------------------- #
# Tiling helpers
# --------------------------------------------------------------------------- #
def _round_up(x, m):
    return ((x + m - 1) // m) * m


def _sublane_unit(dtype):
    """Packed sublane unit of the streamed tile dtype."""
    itemsize = jnp.dtype(dtype).itemsize
    return {4: 8, 2: 16, 1: 32}.get(itemsize, 8)


def _pick_tiles(B, C, unit, tb_cap, tc_cap):
    # C tile: multiple of 128 lanes, as large as the cap (or the padded C).
    tc_cap = max(128, (tc_cap // 128) * 128)
    tc = min(tc_cap, _round_up(C, 128))
    # B tile: multiple of the packed sublane unit; prefer >= 2 row tiles so the
    # batch axis can shard across both TensorCores on v7x.
    tb_cap = max(unit, (tb_cap // unit) * unit)
    b_al = _round_up(B, unit)
    tb = min(tb_cap, b_al)
    if b_al >= 2 * unit:
        tb = min(tb, max(unit, (b_al // 2 // unit) * unit))
    return tb, tc


# --------------------------------------------------------------------------- #
# Jitted wrapper
# --------------------------------------------------------------------------- #
@functools.partial(jax.jit, static_argnames=("gamma", "tb", "tc"))
def _angle_loss(cos_theta, phi_theta, target, scale, *, gamma, tb, tc):
    B, C = cos_theta.shape
    tgt = jnp.reshape(target, (B, 1)).astype(jnp.int32)
    scale = jnp.asarray(scale, jnp.float32)

    # Only the target column of phi/cos is needed outside the streamed logsumexp.
    cos_t = jnp.take_along_axis(cos_theta, tgt, axis=1).astype(jnp.float32)
    phi_t = jnp.take_along_axis(phi_theta, tgt, axis=1).astype(jnp.float32)
    adj = cos_t + (phi_t - cos_t) * scale            # (B, 1) adjusted target logit

    # Pad to tile multiples. Padded columns get a huge negative (they vanish
    # from the logsumexp); padded rows get zeros and are dropped before mean.
    b_pad = _round_up(B, tb)
    c_pad = _round_up(C, tc)
    NEG = -1e30
    cos_p = cos_theta
    if c_pad != C:
        cos_p = jnp.pad(cos_p, ((0, 0), (0, c_pad - C)), constant_values=NEG)
    if b_pad != B:
        cos_p = jnp.pad(cos_p, ((0, b_pad - B), (0, 0)), constant_values=0.0)
        tgt = jnp.pad(tgt, ((0, b_pad - B), (0, 0)), constant_values=0)
        adj = jnp.pad(adj, ((0, b_pad - B), (0, 0)), constant_values=0.0)

    itemsize = jnp.dtype(cos_p.dtype).itemsize
    cost = pl.CostEstimate(
        flops=int(5 * b_pad * c_pad),
        transcendentals=int(b_pad * c_pad + 4 * b_pad),
        bytes_accessed=int(b_pad * c_pad * itemsize + 16 * b_pad),
    )

    kernel = functools.partial(_angle_loss_kernel, gamma=gamma)
    per_row = pl.pallas_call(
        kernel,
        out_shape=jax.ShapeDtypeStruct((b_pad, 1), jnp.float32),
        grid=(b_pad // tb, c_pad // tc),
        in_specs=[
            pl.BlockSpec((tb, 1), lambda b, c: (b, 0)),     # target
            pl.BlockSpec((tb, 1), lambda b, c: (b, 0)),     # adjusted target logit
            pl.BlockSpec((tb, tc), lambda b, c: (b, c)),    # cos_theta (streamed)
        ],
        out_specs=pl.BlockSpec((tb, 1), lambda b, c: (b, 0)),
        scratch_shapes=[pltpu.VMEM((tb, 1), jnp.float32)] * 2,
        compiler_params=pltpu.CompilerParams(
            # On v7x, if the trace shows one idle TensorCore, switch axis 0 to
            # pltpu.CORE_PARALLEL (or a core_map split).
            dimension_semantics=("parallel", "arbitrary"),
            vmem_limit_bytes=32 * 1024 * 1024),
        cost_estimate=cost,
    )(tgt, adj, cos_p)

    return jnp.mean(per_row[:B, 0])


# --------------------------------------------------------------------------- #
# Module wrapper (matches the PyTorch AngleLoss API)
# --------------------------------------------------------------------------- #
class AngleLoss:
    """Lambda annealing stays in Python; the resulting scale is a runtime
    scalar, so no re-compile happens per training step."""

    def __init__(self, gamma=0, tb_cap=256, tc_cap=4096):
        self.gamma = gamma
        self.it = 0
        self.LambdaMin = 5.0
        self.LambdaMax = 1500.0
        self.lamb = 1500.0
        self.tb_cap = tb_cap
        self.tc_cap = tc_cap

    def __call__(self, inputs, target):
        self.it += 1
        self.lamb = max(self.LambdaMin, self.LambdaMax / (1 + 0.1 * self.it))
        cos_theta, phi_theta = inputs
        B, C = cos_theta.shape
        unit = _sublane_unit(cos_theta.dtype)
        tb, tc = _pick_tiles(B, C, unit, self.tb_cap, self.tc_cap)
        scale = jnp.float32(1.0 / (1.0 + self.lamb))
        return _angle_loss(cos_theta, phi_theta, target, scale,
                           gamma=self.gamma, tb=tb, tc=tc)


# --------------------------------------------------------------------------- #
# Pure-JAX reference + tests
# --------------------------------------------------------------------------- #
def _reference(cos_theta, phi_theta, target, lamb, gamma):
    B, C = cos_theta.shape
    cos = cos_theta.astype(jnp.float32)
    phi = phi_theta.astype(jnp.float32)
    onehot = jax.nn.one_hot(target, C, dtype=jnp.float32)
    out = cos + onehot * (phi - cos) / (1.0 + lamb)
    logp = jax.nn.log_softmax(out, axis=1)
    logpt = jnp.sum(logp * onehot, axis=1)
    pt = jnp.exp(logpt)
    loss = -((1.0 - pt) ** gamma) * logpt if gamma != 0 else -logpt
    return jnp.mean(loss)


if __name__ == "__main__":
    key = jax.random.PRNGKey(0)

    # --- Test 1: small single-tile case (B=8, C=16), gamma=0 ----------------
    B, C = 8, 16
    k1, k2, k3 = jax.random.split(key, 3)
    cos_theta = jnp.clip(jax.random.normal(k1, (B, C), jnp.float32), -1.0, 1.0)
    phi_theta = jnp.clip(jax.random.normal(k2, (B, C), jnp.float32), -2.0, 1.0)
    target = jax.random.randint(k3, (B,), 0, C, dtype=jnp.int32)

    loss_fn = AngleLoss(gamma=0)
    loss = jax.block_until_ready(loss_fn((cos_theta, phi_theta), target))
    ref = _reference(cos_theta, phi_theta, target, loss_fn.lamb, loss_fn.gamma)
    assert jnp.allclose(loss, ref, atol=1e-5, rtol=1e-5), (loss, ref)

    # --- Test 2: multi C-tile (streaming logsumexp), gamma=2 ----------------
    B2, C2 = 8, 256
    k4, k5, k6 = jax.random.split(jax.random.PRNGKey(1), 3)
    cos2 = jnp.clip(jax.random.normal(k4, (B2, C2), jnp.float32), -1.0, 1.0)
    phi2 = jnp.clip(jax.random.normal(k5, (B2, C2), jnp.float32), -2.0, 1.0)
    tgt2 = jax.random.randint(k6, (B2,), 0, C2, dtype=jnp.int32)

    loss_fn2 = AngleLoss(gamma=2, tc_cap=128)   # force 2 C tiles
    loss2 = jax.block_until_ready(loss_fn2((cos2, phi2), tgt2))
    ref2 = _reference(cos2, phi2, tgt2, loss_fn2.lamb, loss_fn2.gamma)
    assert jnp.allclose(loss2, ref2, atol=1e-5, rtol=1e-5), (loss2, ref2)

    # --- Test 3: bf16 inputs, non-tile-aligned B and C (padding path) -------
    B3, C3 = 10, 200
    k7, k8, k9 = jax.random.split(jax.random.PRNGKey(2), 3)
    cos3 = jnp.clip(jax.random.normal(k7, (B3, C3), jnp.float32), -1.0, 1.0).astype(jnp.bfloat16)
    phi3 = jnp.clip(jax.random.normal(k8, (B3, C3), jnp.float32), -2.0, 1.0).astype(jnp.bfloat16)
    tgt3 = jax.random.randint(k9, (B3,), 0, C3, dtype=jnp.int32)

    loss_fn3 = AngleLoss(gamma=2, tc_cap=128)   # 2 C tiles, padded rows + cols
    loss3 = jax.block_until_ready(loss_fn3((cos3, phi3), tgt3))
    ref3 = _reference(cos3, phi3, tgt3, loss_fn3.lamb, loss_fn3.gamma)
    assert jnp.allclose(loss3, ref3, atol=1e-4, rtol=1e-4), (loss3, ref3)

    print("KERNEL_OK")
</pallas_src>

<mosaic_0001>
module attributes {stable_mosaic.version = 11 : i64} {
  func.func @_angle_loss_kernel(%arg0: i32, %arg1: i32, %arg2: memref<8x1xi32, #tpu.memory_space<vmem>>, %arg3: memref<8x1xf32, #tpu.memory_space<vmem>>, %arg4: memref<8x128xf32, #tpu.memory_space<vmem>>, %arg5: memref<8x1xf32, #tpu.memory_space<vmem>>, %arg6: memref<8x1xf32, #tpu.memory_space<vmem>>, %arg7: memref<8x1xf32, #tpu.memory_space<vmem>>) attributes {dimension_semantics = [#tpu.dimension_semantics<parallel>, #tpu.dimension_semantics<arbitrary>], iteration_bounds = array<i64: 1, 1>, scalar_prefetch = 0 : i64, scratch_operands = 2 : i64, tpu.core_type = #tpu.core_type<tc>, window_params = [{transform_indices = @transform_0, window_bounds = array<i64: 8, 1>}, {transform_indices = @transform_1, window_bounds = array<i64: 8, 1>}, {transform_indices = @transform_2, window_bounds = array<i64: 8, 128>}, {transform_indices = @transform_3, window_bounds = array<i64: 8, 1>}]} {
    %c0_i32 = arith.constant 0 : i32
    %0 = arith.cmpi eq, %arg1, %c0_i32 : i32
    %1 = arith.extui %0 : i1 to i32
    %c0_i32_0 = arith.constant 0 : i32
    %2 = arith.cmpi ne, %1, %c0_i32_0 : i32
    scf.if %2 {
      %cst_19 = arith.constant 0xFF800000 : f32
      %35 = vector.broadcast %cst_19 : f32 to vector<8x1xf32>
      %c0_20 = arith.constant 0 : index
      %c0_21 = arith.constant 0 : index
      %36 = vector.load %arg6[%c0_20, %c0_21] : memref<8x1xf32, #tpu.memory_space<vmem>>, vector<8x1xf32>
      tpu.vector_store %arg6[%c0_20, %c0_21], %35 {strides = array<i32>} : memref<8x1xf32, #tpu.memory_space<vmem>>, vector<8x1xf32>,
      %cst_22 = arith.constant 0.000000e+00 : f32
      %37 = vector.broadcast %cst_22 : f32 to vector<8x1xf32>
      %c0_23 = arith.constant 0 : index
      %c0_24 = arith.constant 0 : index
      %38 = vector.load %arg7[%c0_23, %c0_24] : memref<8x1xf32, #tpu.memory_space<vmem>>, vector<8x1xf32>
      tpu.vector_store %arg7[%c0_23, %c0_24], %37 {strides = array<i32>} : memref<8x1xf32, #tpu.memory_space<vmem>>, vector<8x1xf32>,
    } else {
    }
    %c0 = arith.constant 0 : index
    %c0_1 = arith.constant 0 : index
    %3 = vector.load %arg4[%c0, %c0_1] : memref<8x128xf32, #tpu.memory_space<vmem>>, vector<8x128xf32>
    %c0_2 = arith.constant 0 : index
    %c0_3 = arith.constant 0 : index
    %4 = vector.load %arg3[%c0_2, %c0_3] : memref<8x1xf32, #tpu.memory_space<vmem>>, vector<8x1xf32>
    %c0_4 = arith.constant 0 : index
    %c0_5 = arith.constant 0 : index
    %5 = vector.load %arg2[%c0_4, %c0_5] : memref<8x1xi32, #tpu.memory_space<vmem>>, vector<8x1xi32>
    %c128_i32 = arith.constant 128 : i32
    %6 = arith.muli %arg1, %c128_i32 : i32
    %7 = vector.broadcast %6 : i32 to vector<8x1xi32>
    %8 = arith.subi %5, %7 : vector<8x1xi32>
    %9 = tpu.iota {dimensions = array<i32: 1>} : vector<8x128xi32>
    %10 = vector.broadcast %8 : vector<8x1xi32> to vector<8x128xi32>
    %11 = arith.cmpi eq, %9, %10 : vector<8x128xi32>
    %12 = vector.shape_cast %4 : vector<8x1xf32> to vector<8x1xf32>
    %13 = vector.broadcast %12 : vector<8x1xf32> to vector<8x128xf32>
    %14 = arith.select %11, %13, %3 : vector<8x128xi1>, vector<8x128xf32>
    %c0_6 = arith.constant 0 : index
    %c0_7 = arith.constant 0 : index
    %15 = vector.load %arg6[%c0_6, %c0_7] : memref<8x1xf32, #tpu.memory_space<vmem>>, vector<8x1xf32>
    %cst = arith.constant dense<0xFF800000> : vector<8xf32>
    %16 = vector.multi_reduction <maximumf>, %14, %cst [1] : vector<8x128xf32> to vector<8xf32>
    %17 = vector.shape_cast %16 : vector<8xf32> to vector<8x1xf32>
    %18 = arith.maximumf %15, %17 : vector<8x1xf32>
    %c0_8 = arith.constant 0 : index
    %c0_9 = arith.constant 0 : index
    %19 = vector.load %arg6[%c0_8, %c0_9] : memref<8x1xf32, #tpu.memory_space<vmem>>, vector<8x1xf32>
    %20 = arith.subf %19, %18 : vector<8x1xf32>
    %21 = math.exp %20 : vector<8x1xf32>
    %c0_10 = arith.constant 0 : index
    %c0_11 = arith.constant 0 : index
    %22 = vector.load %arg7[%c0_10, %c0_11] : memref<8x1xf32, #tpu.memory_space<vmem>>, vector<8x1xf32>
    %23 = arith.mulf %21, %22 : vector<8x1xf32>
    %24 = vector.broadcast %18 : vector<8x1xf32> to vector<8x128xf32>
    %25 = arith.subf %14, %24 : vector<8x128xf32>
    %26 = math.exp %25 : vector<8x128xf32>
    %cst_12 = arith.constant dense<0.000000e+00> : vector<8xf32>
    %27 = vector.multi_reduction <add>, %26, %cst_12 [1] : vector<8x128xf32> to vector<8xf32>
    %28 = vector.shape_cast %27 : vector<8xf32> to vector<8x1xf32>
    %29 = arith.addf %23, %28 : vector<8x1xf32>
    %c0_13 = arith.constant 0 : index
    %c0_14 = arith.constant 0 : index
    %30 = vector.load %arg7[%c0_13, %c0_14] : memref<8x1xf32, #tpu.memory_space<vmem>>, vector<8x1xf32>
    tpu.vector_store %arg7[%c0_13, %c0_14], %29 {strides = array<i32>} : memref<8x1xf32, #tpu.memory_space<vmem>>, vector<8x1xf32>,
    %c0_15 = arith.constant 0 : index
    %c0_16 = arith.constant 0 : index
    %31 = vector.load %arg6[%c0_15, %c0_16] : memref<8x1xf32, #tpu.memory_space<vmem>>, vector<8x1xf32>
    tpu.vector_store %arg6[%c0_15, %c0_16], %18 {strides = array<i32>} : memref<8x1xf32, #tpu.memory_space<vmem>>, vector<8x1xf32>,
    %c0_i32_17 = arith.constant 0 : i32
    %32 = arith.cmpi eq, %arg1, %c0_i32_17 : i32
    %33 = arith.extui %32 : i1 to i32
    %c0_i32_18 = arith.constant 0 : i32
    %34 = arith.cmpi ne, %33, %c0_i32_18 : i32
    scf.if %34 {
      %c0_19 = arith.constant 0 : index
      %c0_20 = arith.constant 0 : index
      %35 = vector.load %arg6[%c0_19, %c0_20] : memref<8x1xf32, #tpu.memory_space<vmem>>, vector<8x1xf32>
      %c0_21 = arith.constant 0 : index
      %c0_22 = arith.constant 0 : index
      %36 = vector.load %arg7[%c0_21, %c0_22] : memref<8x1xf32, #tpu.memory_space<vmem>>, vector<8x1xf32>
      %37 = math.log %36 : vector<8x1xf32>
      %38 = arith.addf %35, %37 : vector<8x1xf32>
      %39 = arith.subf %4, %38 : vector<8x1xf32>
      %cst_23 = arith.constant 0.000000e+00 : f32
      %40 = vector.broadcast %cst_23 : f32 to vector<8x1xf32>
      %41 = arith.subf %40, %39 : vector<8x1xf32>
      %c0_24 = arith.constant 0 : index
      %c0_25 = arith.constant 0 : index
      %42 = vector.load %arg5[%c0_24, %c0_25] : memref<8x1xf32, #tpu.memory_space<vmem>>, vector<8x1xf32>
      tpu.vector_store %arg5[%c0_24, %c0_25], %41 {strides = array<i32>} : memref<8x1xf32, #tpu.memory_space<vmem>>, vector<8x1xf32>,
    } else {
    }
    return
  }
  func.func @transform_0(%arg0: i32, %arg1: i32) -> (i32, i32) {
    %c0_i32 = arith.constant 0 : i32
    %c0_i32_0 = arith.constant 0 : i32
    return %arg0, %c0_i32 : i32, i32
  }
  func.func @transform_1(%arg0: i32, %arg1: i32) -> (i32, i32) {
    %c0_i32 = arith.constant 0 : i32
    %c0_i32_0 = arith.constant 0 : i32
    return %arg0, %c0_i32 : i32, i32
  }
  func.func @transform_2(%arg0: i32, %arg1: i32) -> (i32, i32) {
    %c0_i32 = arith.constant 0 : i32
    return %arg0, %arg1 : i32, i32
  }
  func.func @transform_3(%arg0: i32, %arg1: i32) -> (i32, i32) {
    %c0_i32 = arith.constant 0 : i32
    %c0_i32_0 = arith.constant 0 : i32
    return %arg0, %c0_i32 : i32, i32
  }
}

</mosaic_0001>

<bundles_post_ra>
// kernel: _angle_loss.1
= control target key start
LH: loop header
LB: loop body
LE: loop exit
PB: predicated region body
PF: predicated region fallthrough
CT: control target
= control target key end

     0   :  { %v88_v0 = vmov 0   ;;  %vm18_vm0 = vcmask 7168   ;;  %v89_v3 = vmov -inf   ;;  %v27_v4 = vlaneseq  ;;  %s128_s0 = inlined_call_operand.vmem [shape: s32[8,1], index: 0, kind: input, shape index: {}]   ;;  %s129_s1 = inlined_call_operand.vmem [shape: f32[8,1], index: 1, kind: input, shape index: {}]   ;;  %s130_s2 = inlined_call_operand.vmem [shape: f32[8,128], index: 2, kind: input, shape index: {}]   ;;  %s131_s3 = inlined_call_operand.vmem [shape: f32[8,1], index: 3, kind: output, shape index: {}]  }
   0x1   :  { %80 = vset.pattern.permute.xlu0 %v88_v0  ;;  %v23_v1 = vld [vmem:[%s128_s0] sm:$0xff]  ;;  %81 = vset.pattern.permute.xlu1 %v88_v0  ;;  %19 = vst.msk [vmem:[#allocation2] sm:$0xff] %vm18_vm0, %v89_v3  ;;  %v90_v10 = vmov 0.0  }
   0x2   :  { %30 = vperm.xlu0 %80, %v23_v1   ;;  %v22_v2 = vld [vmem:[%s129_s1] sm:$0xff]  ;;  %v28_v5 = vand.u32 127, %v27_v4  ;;  %20 = vst.msk [vmem:[#allocation3] sm:$0xff] %vm18_vm0, %v90_v10 }
   0x3   :  { %v21_v7 = vld [vmem:[%s130_s2] sm:$0xff] }
   0x6   :  { %35 = vperm.xlu0 %80, %v22_v2  }
   0x8   :  { %v39_v11 = vld [vmem:[#allocation2] sm:$0xff] }
   0x9   :  { %v46_v21 = vld [vmem:[#allocation3] sm:$0xff] }
  0x81   :  { %v31_v6 = vpop.permute.xlu0 %30 }
  0x82   :  { %vm32_vm1 = vcmp.eq.s32.totalorder %v28_v5, %v31_v6 }
  0x85   :  { %v36_v8 = vpop.permute.xlu0 %35 }
  0x86   :  { %v38_v9 = vsel %vm32_vm1, %v36_v8, %v21_v7 }
  0x87   :  { %40 = vmax.xlane.f32.xlu1 %v38_v9 }
 0x114   :  { %v41_v12 = vpop.xlane.xlu1 %40 }
 0x115   :  { %v42_v13 = vmax.f32 %v39_v11, %v41_v12 }
 0x117   :  { %v43_v14 = vsub.f32 %v39_v11, %v42_v13  ;;  %61 = vst.msk [vmem:[#allocation2] sm:$0xff] %vm18_vm0, %v42_v13  ;;  %50 = vperm.xlu1 %81, %v42_v13  }
 0x119   :  { %v44_v19 = vmul.f32 1.442695, %v43_v14 }
 0x11e   :  { %v65_v28 = vld [vmem:[#allocation2] sm:$0xff] }
 0x196   :  { %v51_v15 = vpop.permute.xlu1 %50 }
 0x197   :  { %v53_v16 = vsub.f32 %v38_v9, %v51_v15 }
 0x199   :  { %v54_v17 = vmul.f32 1.442695, %v53_v16 }
 0x19b   :  { %82 = vpow2.f32 %v54_v17 }
 0x19c   :  { %84 = vpow2.f32 %v44_v19 }
 0x1a5   :  { %v83_v18 = vpop.eup %82 }
 0x1a6   :  { %56 = vadd.xlane.f32.xlu0 %v83_v18  ;;  %v85_v20 = vpop.eup %84 }
 0x1a7   :  { %v47_v22 = vmul.f32 %v85_v20, %v46_v21 }
 0x233   :  { %v57_v23 = vpop.xlane.xlu0 %56 }
 0x234   :  { %v58_v24 = vadd.f32 %v57_v23, %v47_v22 }
 0x236   :  { %60 = vst.msk [vmem:[#allocation3] sm:$0xff] %vm18_vm0, %v58_v24 }
 0x23d   :  { %v66_v25 = vld [vmem:[#allocation3] sm:$0xff] }
 0x23e   :  { %86 = vlog2.f32 %v66_v25 }
 0x248   :  { %v87_v26 = vpop.eup %86 }
 0x249   :  { %v68_v27 = vmul.f32 0.6931472, %v87_v26 }
 0x24b   :  { %v69_v29 = vadd.f32 %v68_v27, %v65_v28 }
 0x24d   :  { %v70_v30 = vsub.f32 %v22_v2, %v69_v29 }
 0x24f   :  { %v71_v31 = vsub.f32 0.0, %v70_v30 }
 0x251   :  { %72 = vst.msk [vmem:[%s131_s3] sm:$0xff] %vm18_vm0, %v71_v31 }

</bundles_post_ra>
